<compile_context>
chip_gen: v7x
topology: tpu7x:2x2x1
jax: 0.10.0
libtpu: 0.0.40
codegen_flags: <defaults>
</compile_context>

<pallas_src>
import jax
import jax.numpy as jnp
from jax.experimental import pallas as pl
from jax.experimental.pallas import tpu as pltpu


def _dma_passthrough_kernel(x_hbm_ref, o_hbm_ref, sem):
    # Whole-array HBM -> HBM copy: one DMA, no VMEM staging, no grid.
    cp = pltpu.make_async_copy(x_hbm_ref, o_hbm_ref, sem)
    cp.start()
    cp.wait()


@jax.jit
def _passthrough_pallas(message: jax.Array) -> jax.Array:
    """Bit-exact identity of `message` via a single HBM->HBM DMA.

    No tiling, no padding, no tail slice: the array is copied at its native
    shape, which is both the minimum possible HBM traffic (1 read + 1 write)
    and generation-agnostic (VMEM capacity / sublane packing never enter).
    """
    nbytes = message.size * message.dtype.itemsize
    return pl.pallas_call(
        _dma_passthrough_kernel,
        out_shape=jax.ShapeDtypeStruct(message.shape, message.dtype),
        in_specs=[pl.BlockSpec(memory_space=pl.ANY)],
        out_specs=pl.BlockSpec(memory_space=pl.ANY),
        scratch_shapes=[pltpu.SemaphoreType.DMA],
        cost_estimate=pl.CostEstimate(
            flops=0, transcendentals=0, bytes_accessed=2 * nbytes),
    )(message)


def receiver_forward(message, receiver_input=None, aux_input=None):
    """Mirror of Receiver.forward: the reference body is `pass`, i.e. it does
    no computation and returns None.  The fastest correct implementation is
    no kernel launch and no host sync at all."""
    # TODO(synk): the reference forward contains no ops; nothing to port here.
    return None


if __name__ == "__main__":
    key = jax.random.PRNGKey(0)
    k_msg, k_inp = jax.random.split(key)

    # Small shapes consistent with a typical (message, receiver_input) call.
    batch, hidden = 2, 32
    message = jax.random.normal(k_msg, (batch, hidden), dtype=jnp.float32)
    receiver_input = jax.random.normal(k_inp, (batch, hidden), dtype=jnp.float32)

    # Forward path: matches the reference exactly (returns None, launches nothing).
    out = receiver_forward(message, receiver_input, aux_input=None)
    assert out is None

    # Exercise the optimized Pallas pass-through kernel once (demo only; it is
    # intentionally NOT on the forward path).
    roundtrip = jax.block_until_ready(_passthrough_pallas(message))
    assert roundtrip.shape == message.shape
    assert roundtrip.dtype == message.dtype
    assert jnp.array_equal(roundtrip, message)

    print("KERNEL_OK")
</pallas_src>

<mosaic_0001>
module attributes {stable_mosaic.version = 11 : i64} {
  func.func @_dma_passthrough_kernel(%arg0: memref<2x32xf32, #tpu.memory_space<any>>, %arg1: memref<2x32xf32, #tpu.memory_space<any>>, %arg2: memref<!tpu.dma_semaphore, #tpu.memory_space<semaphore_mem>>) attributes {dimension_semantics = [], scalar_prefetch = 0 : i64, scratch_operands = 1 : i64, tpu.core_type = #tpu.core_type<tc>} {
    tpu.enqueue_dma source(%arg0 : memref<2x32xf32, #tpu.memory_space<any>>) target(%arg1 : memref<2x32xf32, #tpu.memory_space<any>>) target_semaphore(%arg2 : memref<!tpu.dma_semaphore, #tpu.memory_space<semaphore_mem>>)
    tpu.wait_dma2 semaphore(%arg2 : memref<!tpu.dma_semaphore, #tpu.memory_space<semaphore_mem>>) src(%arg0 : memref<2x32xf32, #tpu.memory_space<any>>) dst(%arg1 : memref<2x32xf32, #tpu.memory_space<any>>)
    return
  }
}

</mosaic_0001>

<bundles_post_ra>
// kernel: _passthrough_pallas.1
= control target key start
LH: loop header
LB: loop body
LE: loop exit
PB: predicated region body
PF: predicated region fallthrough
CT: control target
= control target key end

     0   :  { %s34_s6 = smov [#allocation2]   ;;  %s35_s7 = smov [#allocation3]   ;;  %s53_s0 = inlined_call_operand.hbm [shape: f32[2,32], index: 0, kind: input, shape index: {}]   ;;  %s54_s1 = inlined_call_operand.hbm [shape: f32[2,32], index: 1, kind: output, shape index: {}]  }
   0x1   :  { %s36_s8 = smov 0  }
   0x2   :  { %18 = dma.general %s53_s0, 32, %s54_s1, %s34_s6, %s35_s7, [#allocation4], %s36_s8, 0  }
   0x3   :  { %32 = dma.done.wait [#allocation2], 32 }
   0x4   :  { %33 = vsyncadd [#allocation2], 4294967264 }
   0x5   :  { %22 = vsyncmov [#allocation2] }
   0x8   :  { %s23_s13 = vpop.sfrf %22 }
   0x9   :  { %p28_p0 = scmp.ne.s32.totalorder %s23_s13, 0 }
   0xb   :  { %27 = shalt.err (%p28_p0)  }

</bundles_post_ra>
